<compile_context>
chip_gen: v7x
topology: tpu7x:2x2x1
jax: 0.10.0
libtpu: 0.0.40
codegen_flags: <defaults>
</compile_context>

<pallas_src>
import functools

import jax
import jax.numpy as jnp
from jax import lax
from jax.experimental import pallas as pl
from jax.experimental.pallas import tpu as pltpu


def _round_up(x, m):
    return -(-x // m) * m


def cnn1d_kernel(x_ref, wcat_ref, b_ref, fcw_ref, fcb_ref, out_ref, *, lh_pad):
    """Fused conv/relu/pool/fc for one batch tile. Everything is 2-D, lane-dense."""
    wcat = wcat_ref[...]                                  # (W, 2*lh_pad), maybe bf16
    x = x_ref[...].astype(wcat.dtype)                     # (B_tile, W)
    # Single MXU matmul covering both even- and odd-position conv outputs.
    cc = jnp.dot(x, wcat, preferred_element_type=jnp.float32)   # (B_tile, 2*lh_pad) f32
    ce = cc[:, :lh_pad]                                   # lane-aligned static slices
    co = cc[:, lh_pad:]
    # maxpool(relu(conv)) == relu(max(conv_even, conv_odd)); bias added once.
    pooled = jnp.maximum(jnp.maximum(ce, co) + b_ref[...], 0.0)  # (B_tile, lh_pad)
    fcw = fcw_ref[...]                                    # (lh_pad, C_PAD), maybe bf16
    out = jnp.dot(pooled.astype(fcw.dtype), fcw,
                  preferred_element_type=jnp.float32) + fcb_ref[...]
    out_ref[...] = out.astype(out_ref.dtype)


def preprocess_cnn1d_params(conv_w, conv_b, fc_w, fc_b, *, window_size, kernel_size,
                            hidden_dim, num_classes, mxu_dtype=jnp.float32):
    """One-time weight preprocessing (done outside the per-forward hot path).

    Folds the Conv1d geometry + MaxPool1d(2) layout into a single concatenated
    Toeplitz weight so the kernel is just two lane-dense matmuls.
    """
    W, K, H, C = window_size, kernel_size, hidden_dim, num_classes
    L_conv = W - (K - 1)
    L_pool = L_conv // 2
    LH = L_pool * H
    LH_pad = _round_up(LH, 128)
    C_PAD = 128

    # we[s, l*H + h] = conv_w[h, 0, s - 2l] (0 elsewhere) so that
    # (x @ we)[b, l*H + h] = conv[b, 2l, h]; wo likewise for positions 2l+1.
    w_kh = conv_w[:, 0, :].T.astype(jnp.float32)                     # (K, H)
    s_idx = jnp.arange(W)[:, None]                                   # (W, 1)

    def toeplitz(t_start):
        t = 2 * jnp.arange(L_pool)[None, :] + t_start                # conv output positions
        off = s_idx - t                                              # (W, L_pool)
        valid = (off >= 0) & (off < K)
        wm = jnp.where(valid[:, :, None], w_kh[jnp.clip(off, 0, K - 1)], 0.0)
        wm = wm.reshape(W, LH)
        return jnp.zeros((W, LH_pad), jnp.float32).at[:, :LH].set(wm)

    wcat = jnp.concatenate([toeplitz(0), toeplitz(1)], axis=1).astype(mxu_dtype)

    bias = jnp.zeros((1, LH_pad), jnp.float32).at[:, :LH].set(
        jnp.tile(conv_b.astype(jnp.float32), L_pool))

    # torch flattens pooled (B, H, L_pool) as f = h*L_pool + l; our layout is
    # l*H + h -> permute the FC weight; pad rows to LH_pad, cols to 128 lanes.
    fcw = jnp.transpose(fc_w.reshape(C, H, L_pool), (2, 1, 0)).reshape(LH, C)
    fcw_p = (jnp.zeros((LH_pad, C_PAD), jnp.float32)
             .at[:LH, :C].set(fcw.astype(jnp.float32)).astype(mxu_dtype))
    fcb_p = jnp.zeros((1, C_PAD), jnp.float32).at[:, :C].set(fc_b.astype(jnp.float32))

    return dict(wcat=wcat, bias=bias, fcw=fcw_p, fcb=fcb_p)


def _choose_batch_tiling(B, max_tile=1024):
    """Tile the batch: multiple of 8, >=2 grid steps when B_pad >= 16 (v7x
    megacore), tile capped at 1024 (VMEM stays tiny: ~1.5 MiB double-buffered)."""
    B8 = _round_up(B, 8)
    if B8 < 16:
        return B8, B8
    n_tiles = max(2, -(-B8 // max_tile))
    tile = _round_up(-(-B8 // n_tiles), 8)
    return tile, tile * n_tiles


@functools.partial(jax.jit, static_argnames=("num_classes", "out_dtype"))
def cnn1d_forward(x, wcat, bias, fcw, fcb, *, num_classes, out_dtype=jnp.float32):
    B, W = x.shape
    lh_pad2 = wcat.shape[1]
    lh_pad = lh_pad2 // 2
    C_PAD = fcw.shape[1]

    B_tile, B_pad = _choose_batch_tiling(B)
    x_p = x.astype(jnp.float32)
    if B_pad != B:
        x_p = jnp.zeros((B_pad, W), jnp.float32).at[:B].set(x_p)

    kern = functools.partial(cnn1d_kernel, lh_pad=lh_pad)
    out = pl.pallas_call(
        kern,
        out_shape=jax.ShapeDtypeStruct((B_pad, C_PAD), out_dtype),
        grid=(B_pad // B_tile,),
        in_specs=[
            pl.BlockSpec((B_tile, W), lambda i: (i, 0)),       # x: tiled over batch
            pl.BlockSpec((W, lh_pad2), lambda i: (0, 0)),      # merged even|odd conv weights
            pl.BlockSpec((1, lh_pad), lambda i: (0, 0)),       # conv bias (per l*H+h lane)
            pl.BlockSpec((lh_pad, C_PAD), lambda i: (0, 0)),   # FC weight (permuted, padded)
            pl.BlockSpec((1, C_PAD), lambda i: (0, 0)),        # FC bias (padded)
        ],
        out_specs=pl.BlockSpec((B_tile, C_PAD), lambda i: (i, 0)),
        compiler_params=pltpu.CompilerParams(
            dimension_semantics=("parallel",)),                # megacore sharding on v7x
    )(x_p, wcat, bias, fcw, fcb)
    return out[:B, :num_classes]


def reference_forward(x, conv_w, conv_b, fc_w, fc_b, *, hidden_dim):
    # Pure-JAX replica of the PyTorch forward (NCL layout) for validation.
    B, _ = x.shape
    xin = x[:, None, :]                                              # (B, 1, W)
    conv = lax.conv_general_dilated(xin, conv_w, window_strides=(1,), padding="VALID",
                                    dimension_numbers=("NCH", "OIH", "NCH"))
    conv = jnp.maximum(conv + conv_b[None, :, None], 0.0)            # (B, H, L_conv)
    L_conv = conv.shape[-1]
    L_pool = L_conv // 2
    pooled = conv[:, :, :2 * L_pool].reshape(B, hidden_dim, L_pool, 2).max(-1)
    flat = pooled.reshape(B, -1)                                     # torch flatten order
    return flat @ fc_w.T + fc_b[None, :]


if __name__ == "__main__":
    B = 4
    window_size = 16
    hidden_dim = 32
    kernel_size = 3
    num_classes = 2
    L_pool = (window_size - (kernel_size - 1)) // 2                  # == conv_out_length

    key = jax.random.PRNGKey(0)
    kx, kw, kb, kfw, kfb = jax.random.split(key, 5)
    x = jax.random.normal(kx, (B, window_size), jnp.float32)
    conv_w = jax.random.normal(kw, (hidden_dim, 1, kernel_size), jnp.float32) * 0.1
    conv_b = jax.random.normal(kb, (hidden_dim,), jnp.float32) * 0.1
    fc_w = jax.random.normal(kfw, (num_classes, hidden_dim * L_pool), jnp.float32) * 0.1
    fc_b = jax.random.normal(kfb, (num_classes,), jnp.float32) * 0.1

    # One-time preprocessing (cached across forwards); f32 MXU path for exact
    # validation.  Pass mxu_dtype=jnp.bfloat16 / out_dtype=jnp.bfloat16 on
    # v6e/v7x for MXU throughput and halved output HBM writeback.
    params = preprocess_cnn1d_params(
        conv_w, conv_b, fc_w, fc_b,
        window_size=window_size, kernel_size=kernel_size,
        hidden_dim=hidden_dim, num_classes=num_classes,
        mxu_dtype=jnp.float32)

    out = cnn1d_forward(x, params["wcat"], params["bias"], params["fcw"], params["fcb"],
                        num_classes=num_classes)
    out = jax.block_until_ready(out)

    ref = reference_forward(x, conv_w, conv_b, fc_w, fc_b, hidden_dim=hidden_dim)
    assert out.shape == (B, num_classes)
    assert jnp.allclose(out, ref, atol=1e-4, rtol=1e-4), (out, ref)
    print("KERNEL_OK")
</pallas_src>

<mosaic_0001>
module attributes {stable_mosaic.version = 11 : i64} {
  func.func @cnn1d_kernel(%arg0: i32, %arg1: memref<8x16xf32, #tpu.memory_space<vmem>>, %arg2: memref<16x512xf32, #tpu.memory_space<vmem>>, %arg3: memref<1x256xf32, #tpu.memory_space<vmem>>, %arg4: memref<256x128xf32, #tpu.memory_space<vmem>>, %arg5: memref<1x128xf32, #tpu.memory_space<vmem>>, %arg6: memref<8x128xf32, #tpu.memory_space<vmem>>) attributes {dimension_semantics = [#tpu.dimension_semantics<parallel>], iteration_bounds = array<i64: 1>, scalar_prefetch = 0 : i64, scratch_operands = 0 : i64, tpu.core_type = #tpu.core_type<tc>, window_params = [{transform_indices = @transform_0, window_bounds = array<i64: 8, 16>}, {pipeline_mode = #tpu.pipeline_mode<synchronous>, transform_indices = @transform_1, window_bounds = array<i64: 16, 512>}, {pipeline_mode = #tpu.pipeline_mode<synchronous>, transform_indices = @transform_2, window_bounds = array<i64: 1, 256>}, {pipeline_mode = #tpu.pipeline_mode<synchronous>, transform_indices = @transform_3, window_bounds = array<i64: 256, 128>}, {pipeline_mode = #tpu.pipeline_mode<synchronous>, transform_indices = @transform_4, window_bounds = array<i64: 1, 128>}, {transform_indices = @transform_5, window_bounds = array<i64: 8, 128>}]} {
    %c0 = arith.constant 0 : index
    %c0_0 = arith.constant 0 : index
    %0 = vector.load %arg2[%c0, %c0_0] : memref<16x512xf32, #tpu.memory_space<vmem>>, vector<16x512xf32>
    %c0_1 = arith.constant 0 : index
    %c0_2 = arith.constant 0 : index
    %1 = vector.load %arg1[%c0_1, %c0_2] : memref<8x16xf32, #tpu.memory_space<vmem>>, vector<8x16xf32>
    %cst = arith.constant dense<0.000000e+00> : vector<8x512xf32>
    %2 = tpu.matmul %1, %0, %cst {dimension_numbers = #tpu.dot_dimension_numbers<[1], [0], [0], [1], [0, 0, 1, 1], [], []>} : vector<8x16xf32>, vector<16x512xf32>, vector<8x512xf32> -> vector<8x512xf32>
    %3 = vector.extract_strided_slice %2 {offsets = [0, 0], sizes = [8, 256], strides = [1, 1]} : vector<8x512xf32> to vector<8x256xf32>
    %4 = vector.extract_strided_slice %2 {offsets = [0, 256], sizes = [8, 256], strides = [1, 1]} : vector<8x512xf32> to vector<8x256xf32>
    %5 = arith.maximumf %3, %4 : vector<8x256xf32>
    %c0_3 = arith.constant 0 : index
    %c0_4 = arith.constant 0 : index
    %6 = vector.load %arg3[%c0_3, %c0_4] : memref<1x256xf32, #tpu.memory_space<vmem>>, vector<1x256xf32>
    %7 = vector.broadcast %6 : vector<1x256xf32> to vector<8x256xf32>
    %8 = arith.addf %5, %7 : vector<8x256xf32>
    %cst_5 = arith.constant 0.000000e+00 : f32
    %9 = vector.broadcast %cst_5 : f32 to vector<8x256xf32>
    %10 = arith.maximumf %8, %9 : vector<8x256xf32>
    %c0_6 = arith.constant 0 : index
    %c0_7 = arith.constant 0 : index
    %11 = vector.load %arg4[%c0_6, %c0_7] : memref<256x128xf32, #tpu.memory_space<vmem>>, vector<256x128xf32>
    %cst_8 = arith.constant dense<0.000000e+00> : vector<8x128xf32>
    %12 = tpu.matmul %10, %11, %cst_8 {dimension_numbers = #tpu.dot_dimension_numbers<[1], [0], [0], [1], [0, 0, 1, 1], [], []>} : vector<8x256xf32>, vector<256x128xf32>, vector<8x128xf32> -> vector<8x128xf32>
    %c0_9 = arith.constant 0 : index
    %c0_10 = arith.constant 0 : index
    %13 = vector.load %arg5[%c0_9, %c0_10] : memref<1x128xf32, #tpu.memory_space<vmem>>, vector<1x128xf32>
    %14 = vector.broadcast %13 : vector<1x128xf32> to vector<8x128xf32>
    %15 = arith.addf %12, %14 : vector<8x128xf32>
    %c0_11 = arith.constant 0 : index
    %c0_12 = arith.constant 0 : index
    %16 = vector.load %arg6[%c0_11, %c0_12] : memref<8x128xf32, #tpu.memory_space<vmem>>, vector<8x128xf32>
    tpu.vector_store %arg6[%c0_11, %c0_12], %15 {strides = array<i32>} : memref<8x128xf32, #tpu.memory_space<vmem>>, vector<8x128xf32>,
    return
  }
  func.func @transform_0(%arg0: i32) -> (i32, i32) {
    %c0_i32 = arith.constant 0 : i32
    %c0_i32_0 = arith.constant 0 : i32
    return %arg0, %c0_i32 : i32, i32
  }
  func.func @transform_1(%arg0: i32) -> (i32, i32) {
    %c0_i32 = arith.constant 0 : i32
    %c0_i32_0 = arith.constant 0 : i32
    %c0_i32_1 = arith.constant 0 : i32
    return %c0_i32, %c0_i32_0 : i32, i32
  }
  func.func @transform_2(%arg0: i32) -> (i32, i32) {
    %c0_i32 = arith.constant 0 : i32
    %c0_i32_0 = arith.constant 0 : i32
    %c0_i32_1 = arith.constant 0 : i32
    return %c0_i32, %c0_i32_0 : i32, i32
  }
  func.func @transform_3(%arg0: i32) -> (i32, i32) {
    %c0_i32 = arith.constant 0 : i32
    %c0_i32_0 = arith.constant 0 : i32
    %c0_i32_1 = arith.constant 0 : i32
    return %c0_i32, %c0_i32_0 : i32, i32
  }
  func.func @transform_4(%arg0: i32) -> (i32, i32) {
    %c0_i32 = arith.constant 0 : i32
    %c0_i32_0 = arith.constant 0 : i32
    %c0_i32_1 = arith.constant 0 : i32
    return %c0_i32, %c0_i32_0 : i32, i32
  }
  func.func @transform_5(%arg0: i32) -> (i32, i32) {
    %c0_i32 = arith.constant 0 : i32
    %c0_i32_0 = arith.constant 0 : i32
    return %arg0, %c0_i32 : i32, i32
  }
}

</mosaic_0001>

<bundles_post_ra>
// kernel: cnn1d_forward.1
= control target key start
LH: loop header
LB: loop body
LE: loop exit
PB: predicated region body
PF: predicated region fallthrough
CT: control target
= control target key end

     0   :  { %10 = vsyncpa [#allocation3], 0  ;;  %s545_s0 = inlined_call_operand.vmem [shape: f32[8,16], index: 0, kind: input, shape index: {}]   ;;  %s546_s1 = inlined_call_operand.hbm [shape: f32[16,512], index: 1, kind: input, shape index: {}]   ;;  %s547_s2 = inlined_call_operand.vmem [shape: f32[1,256], index: 2, kind: input, shape index: {}]   ;;  %s548_s3 = inlined_call_operand.hbm [shape: f32[256,128], index: 3, kind: input, shape index: {}]   ;;  %s549_s4 = inlined_call_operand.vmem [shape: f32[1,128], index: 4, kind: input, shape index: {}]   ;;  %s550_s5 = inlined_call_operand.vmem [shape: f32[8,128], index: 5, kind: output, shape index: {}]  }
   0x1   :  { %11 = vsyncpa [#allocation5], 0  ;;  %s470_s18 = smov [#allocation2]   ;;  %s422_s22 = scalar_lea.hbm %s546_s1, 1024 }
   0x2   :  { %s19_s19 = sshll.u32 %s470_s18, 4  ;;  %p423_p0 = scmp.ne.s32.totalorder %s546_s1, %s422_s22  ;;  %s20_s19 = int_to_ptr.vmem [resolvable:$true] %s19_s19 }
   0x3   :  { %p426_p1 = scmp.lt.u32.totalorder %s422_s22, %s546_s1 }
   0x5   :  { %p428_p2 = pnand %p426_p1, %p423_p0 }
   0x7   :  { %431 = shalt.err (!%p428_p2)
}
   0x8   :  { %s432_s27 = scalar_lea.vmem %s20_s19, 1024  ;;  %p437_p4 = scmp.lt.s32.totalorder %s20_s19, %s20_s19 }
   0x9   :  { %p433_p3 = scmp.ne.s32.totalorder %s20_s19, %s432_s27  ;;  %p438_p5 = scmp.lt.s32.totalorder %s432_s27, %s432_s27 }
   0xb   :  { %p439_p6 = por %p438_p5, %p437_p4 }
   0xd   :  { %p440_p7 = pnand %p439_p6, %p433_p3 }
   0xf   :  { %443 = shalt.err (!%p440_p7)
}
  0x10   :  { %s471_s28 = smov 512   ;;  %s472_s29 = smov 32  }
  0x11   :  { %25 = dma.hbm_to_vmem [thread:$0]  %s546_s1, 1024, %s20_s19, [#allocation3], %s471_s28, %s471_s28, %s472_s29  }
  0x12   :  { %s473_s7 = smov [#allocation4]   ;;  %s444_s11 = scalar_lea.hbm %s548_s3, 4096 }
  0x13   :  { %s33_s8 = sshll.u32 %s473_s7, 4  ;;  %p445_p8 = scmp.ne.s32.totalorder %s548_s3, %s444_s11  ;;  %s34_s8 = int_to_ptr.vmem [resolvable:$true] %s33_s8 }
  0x14   :  { %p448_p9 = scmp.lt.u32.totalorder %s444_s11, %s548_s3 }
  0x16   :  { %p450_p10 = pnand %p448_p9, %p445_p8 }
  0x18   :  { %453 = shalt.err (!%p450_p10)
}
  0x19   :  { %s454_s16 = scalar_lea.vmem %s34_s8, 4096  ;;  %p459_p12 = scmp.lt.s32.totalorder %s34_s8, %s34_s8 }
  0x1a   :  { %p455_p11 = scmp.ne.s32.totalorder %s34_s8, %s454_s16  ;;  %p460_p13 = scmp.lt.s32.totalorder %s454_s16, %s454_s16 }
  0x1c   :  { %p461_p0 = por %p460_p13, %p459_p12 }
  0x1e   :  { %p462_p1 = pnand %p461_p0, %p455_p11 }
  0x20   :  { %465 = shalt.err (!%p462_p1)
}
  0x21   :  { %s474_s1 = smov 128   ;;  %s475_s17 = smov 8  }
  0x22   :  { %39 = dma.hbm_to_vmem [thread:$0]  %s548_s3, 4096, %s34_s8, [#allocation5], %s474_s1, %s474_s1, %s475_s17  }
  0x23   :  { %466 = dma.done.wait [#allocation3], 1024  }
  0x24   :  { %467 = vsyncadd [#allocation3], 4294966272 }
  0x25   :  { %468 = dma.done.wait [#allocation5], 4096  }
  0x26   :  { %469 = vsyncadd [#allocation5], 4294963200  ;;  %v476_v0 = vmov 0.0   ;;  %v49_v1 = vld [vmem:[#allocation2 + $0x8] sm:$0xff]  ;;  %v48_v3 = vld [vmem:[#allocation2] sm:$0xff]  ;;  %vm57_vm0 = vcmask 130048   ;;  %v207_v62 = vlaneseq }
  0x27   :  { %125 = vmatprep.mubr.f32.mxu1 %v476_v0  ;;  %v53_v2 = vld [vmem:[#allocation2 + $0x28] sm:$0xff]  ;;  %v52_v5 = vld [vmem:[#allocation2 + $0x20] sm:$0xff]  ;;  %v51_v6 = vld [vmem:[#allocation2 + $0x18] sm:$0xff] }
  0x28   :  { %v375_v4 = vpack.c.bf16 %v53_v2, %v49_v1  ;;  %v377_v7 = vpack.c.bf16 %v52_v5, %v48_v3  ;;  %v56_v8 = vld [vmem:[%s545_s0] sm:$0xff]  ;;  %v55_v9 = vld [vmem:[#allocation2 + $0x38] sm:$0xff]  ;;  %v50_v10 = vld [vmem:[#allocation2 + $0x10] sm:$0xff]  ;;  %v208_v63 = vshrl.u32 %v207_v62, 7 }
  0x29   :  { %v54_v11 = vld [vmem:[#allocation2 + $0x30] sm:$0xff]  ;;  %v379_v12 = vpack.c.bf16 %v55_v9, %v51_v6  ;;  %v237_v13 = vld [vmem:[#allocation4 + $0x80] sm:$0xff]  ;;  %v238_v14 = vld [vmem:[#allocation4 + $0x88] sm:$0xff] }
  0x2a   :  { %376 = vmatprep.subr.bf16.mxu1 %v375_v4  ;;  %v221_v15 = vld [vmem:[#allocation4] sm:$0xff]  ;;  %v381_v16 = vpack.c.bf16 %v54_v11, %v50_v10  ;;  %v383_v17 = vpack.c.bf16 %v238_v14, %v237_v13  ;;  %v222_v18 = vld [vmem:[#allocation4 + $0x8] sm:$0xff]  ;;  %v239_v19 = vld [vmem:[#allocation4 + $0x90] sm:$0xff]  ;;  %v213_v3 = vsub.s32 1, %v208_v63 }
  0x2b   :  { %378 = vmatpush1.bf16.msra.mxu1 %v377_v7  ;;  %v240_v20 = vld [vmem:[#allocation4 + $0x98] sm:$0xff]  ;;  %v385_v21 = vpack.c.bf16 %v222_v18, %v221_v15  ;;  %v223_v23 = vld [vmem:[#allocation4 + $0x10] sm:$0xff]  ;;  %v241_v25 = vld [vmem:[#allocation4 + $0xa0] sm:$0xff] }
  0x2c   :  { %380 = vmatprep.subr.bf16.mxu1 %v379_v12  ;;  %v387_v22 = vpack.c.bf16 %v240_v20, %v239_v19  ;;  %v224_v24 = vld [vmem:[#allocation4 + $0x18] sm:$0xff]  ;;  %384 = vmatprep.subr.bf16.mxu0 %v383_v17  ;;  %v242_v26 = vld [vmem:[#allocation4 + $0xa8] sm:$0xff]  ;;  %v225_v29 = vld [vmem:[#allocation4 + $0x20] sm:$0xff] }
  0x2d   :  { %386 = vmatpush3.bf16.msra.mxu0 %v385_v21  ;;  %v389_v27 = vpack.c.bf16 %v224_v24, %v223_v23  ;;  %v391_v28 = vpack.c.bf16 %v242_v26, %v241_v25  ;;  %v226_v30 = vld [vmem:[#allocation4 + $0x28] sm:$0xff]  ;;  %v243_v31 = vld [vmem:[#allocation4 + $0xb0] sm:$0xff]  ;;  %v244_v32 = vld [vmem:[#allocation4 + $0xb8] sm:$0xff] }
  0x2e   :  { %337 = vmatmul.mubr.msk.f32.vlgmr.msra.gmra.mrb[0].mxu1 %vm57_vm0, %v56_v8  ;;  %388 = vmatprep.subr.bf16.mxu0 %v387_v22  ;;  %v393_v33 = vpack.c.bf16 %v226_v30, %v225_v29  ;;  %v395_v34 = vpack.c.bf16 %v244_v32, %v243_v31  ;;  %v227_v35 = vld [vmem:[#allocation4 + $0x30] sm:$0xff]  ;;  %v228_v36 = vld [vmem:[#allocation4 + $0x38] sm:$0xff]  ;;  %v245_v37 = vld [vmem:[#allocation4 + $0xc0] sm:$0xff] }
  0x2f   :  { %382 = vmatpush1.bf16.msra.mxu1 %v381_v16  ;;  %196 = vmatprep.mubr.f32.mxu1 %v476_v0  ;;  %v246_v38 = vld [vmem:[#allocation4 + $0xc8] sm:$0xff]  ;;  %v397_v39 = vpack.c.bf16 %v228_v36, %v227_v35  ;;  %v229_v41 = vld [vmem:[#allocation4 + $0x40] sm:$0xff]  ;;  %v247_v44 = vld [vmem:[#allocation4 + $0xd0] sm:$0xff]  ;;  %v209_v0 = vsub.s32 0, %v208_v63 }
  0x30   :  { %v399_v40 = vpack.c.bf16 %v246_v38, %v245_v37  ;;  %v230_v42 = vld [vmem:[#allocation4 + $0x48] sm:$0xff]  ;;  %v248_v45 = vld [vmem:[#allocation4 + $0xd8] sm:$0xff]  ;;  %v231_v47 = vld [vmem:[#allocation4 + $0x50] sm:$0xff] }
  0x31   :  { %390 = vmatpush3.bf16.msra.mxu0 %v389_v27  ;;  %v401_v43 = vpack.c.bf16 %v230_v42, %v229_v41  ;;  %v403_v46 = vpack.c.bf16 %v248_v45, %v247_v44  ;;  %v232_v48 = vld [vmem:[#allocation4 + $0x58] sm:$0xff]  ;;  %v249_v50 = vld [vmem:[#allocation4 + $0xe0] sm:$0xff]  ;;  %v250_v51 = vld [vmem:[#allocation4 + $0xe8] sm:$0xff] }
  0x32   :  { %338 = vmatmul.mubr.msk.f32.vlgmr.msra.gmra.mrb[2].mxu1 %vm57_vm0, %v56_v8  ;;  %392 = vmatprep.subr.bf16.mxu0 %v391_v28  ;;  %v405_v49 = vpack.c.bf16 %v232_v48, %v231_v47  ;;  %v407_v52 = vpack.c.bf16 %v250_v51, %v249_v50  ;;  %v233_v53 = vld [vmem:[#allocation4 + $0x60] sm:$0xff]  ;;  %v234_v54 = vld [vmem:[#allocation4 + $0x68] sm:$0xff]  ;;  %v251_v56 = vld [vmem:[#allocation4 + $0xf0] sm:$0xff] }
  0x33   :  { %v409_v55 = vpack.c.bf16 %v234_v54, %v233_v53  ;;  %v252_v57 = vld [vmem:[#allocation4 + $0xf8] sm:$0xff]  ;;  %v235_v59 = vld [vmem:[#allocation4 + $0x70] sm:$0xff]  ;;  %v205_v2 = vld [vmem:[%s547_s2] sm:$0x3] }
  0x34   :  { %v411_v58 = vpack.c.bf16 %v252_v57, %v251_v56  ;;  %v236_v60 = vld [vmem:[#allocation4 + $0x78] sm:$0xff]  ;;  %v210_v5 = vrot.slane %v205_v2, %v209_v0  ;;  %v214_v7 = vrot.slane %v205_v2, %v213_v3  ;;  %v339_v16 = vld [vmem:[%s549_s4] ss:$0 sm:$0xff] }
  0x35   :  { %394 = vmatpush3.bf16.msra.mxu0 %v393_v33  ;;  %v413_v61 = vpack.c.bf16 %v236_v60, %v235_v59 }
  0x36   :  { %396 = vmatprep.subr.bf16.mxu0 %v395_v34 }
  0x39   :  { %398 = vmatpush3.bf16.msra.mxu0 %v397_v39 }
  0x3a   :  { %400 = vmatprep.subr.bf16.mxu0 %v399_v40 }
  0x3d   :  { %402 = vmatpush3.bf16.msra.mxu0 %v401_v43 }
  0x3e   :  { %404 = vmatprep.subr.bf16.mxu0 %v403_v46 }
  0x41   :  { %406 = vmatpush3.bf16.msra.mxu0 %v405_v49 }
  0x42   :  { %408 = vmatprep.subr.bf16.mxu0 %v407_v52 }
  0x45   :  { %410 = vmatpush3.bf16.msra.mxu0 %v409_v55 }
  0x46   :  { %412 = vmatprep.subr.bf16.mxu0 %v411_v58 }
  0x49   :  { %414 = vmatpush3.bf16.msra.mxu0 %v413_v61 }
 0x101   :  { %v127_v1 = vpop.f32.mrb[0].mxu1 }
 0x102   :  { %v129_v4 = vpop.f32.mrb[1].mxu1 }
 0x105   :  { %v198_v6 = vpop.f32.mrb[2].mxu1 }
 0x106   :  { %v203_v8 = vmax.f32 %v127_v1, %v198_v6  ;;  %v200_v9 = vpop.f32.mrb[3].mxu1 }
 0x107   :  { %v204_v10 = vmax.f32 %v129_v4, %v200_v9 }
 0x108   :  { %v217_v11 = vadd.f32 %v210_v5, %v203_v8 }
 0x109   :  { %v218_v12 = vadd.f32 %v214_v7, %v204_v10 }
 0x10a   :  { %v219_v14 = vmax.f32 %v217_v11, 0.0 }
 0x10b   :  { %v220_v13 = vmax.f32 %v218_v12, 0.0 }
 0x10d   :  { %324 = vmatprep.mubr.f32.mxu0 %v220_v13 }
 0x10e   :  { %325 = vmatmul.mubr.f32.vlgmr.msra.gmra.mrb[0].mxu0 %v219_v14 }
 0x1e1   :  { %v372_v15 = vpop.f32.mrb[0].mxu0 }
 0x1e2   :  { %v373_v17 = vpop.f32.mrb[1].mxu0 }
 0x1e3   :  { %v374_v18 = vadd.f32 %v373_v17, %v372_v15 }
 0x1e5   :  { %v327_v19 = vadd.f32 %v374_v18, %v339_v16 }
 0x1e7   :  { %330 = vst [vmem:[%s550_s5] sm:$0xff] %v327_v19 }
 0x1e8   :  { %335 = vsyncpa [#allocation3], 1 }
 0x1e9   :  { %336 = vsyncpa [#allocation5], 1 }

</bundles_post_ra>
